<compile_context>
chip_gen: v7x
topology: tpu7x:2x2x1
jax: 0.10.0
libtpu: 0.0.40
codegen_flags: <defaults>
</compile_context>

<pallas_src>
import math
from functools import partial

import numpy as np

import jax
import jax.numpy as jnp
from jax.experimental import pallas as pl
from jax.experimental.pallas import tpu as pltpu


def _nearest_kernel(g_ref, x_ref, o_ref, *, acc_dtype, precision):
    # g_ref: (K, odim)  resident 0/1 selection matrix (exactly one 1 per column)
    # x_ref: (rb, K)    folded input rows for this grid step
    # o_ref: (rb, odim) folded output rows (lane-dense: odim % 128 == 0)
    xb = x_ref[...]
    if xb.dtype != g_ref.dtype:
        xb = xb.astype(g_ref.dtype)
    up = jnp.dot(xb, g_ref[...], precision=precision,
                 preferred_element_type=acc_dtype)
    o_ref[...] = up.astype(o_ref.dtype)


def _num_tensorcores():
    """Best-effort count of TensorCores a 'parallel' grid axis is sharded over
    (megacore).  Used only for block sizing, never for correctness."""
    try:
        kind = jax.devices()[0].device_kind.lower()
    except Exception:
        return 1
    if "v7" in kind or "7x" in kind:
        return 2            # v7x: 2 TensorCores per chip
    if "v5p" in kind or "v4" in kind:
        return 2            # megacore parts
    return 1                # v5e / v6e: single TensorCore


def _choose_fold(width, s, kmax):
    """Fold m input rows per super row, chosen from the OUTPUT width: the
    smallest m with (m*width*s*s) % 128 == 0 (unmasked, lane-dense stores).
    MACs per output element = K = m*width, so keeping K small keeps the
    selection matmul memory-bound."""
    out_unit = width * s * s
    m = 128 // math.gcd(out_unit, 128)
    if m * width > kmax:
        # TODO(synk): pathological widths — a lane-dense store would need K > kmax;
        # fall back to m=1 (masked stores) rather than going MXU-bound.
        m = 1
    return m


def _choose_row_block(num_rows, odim, itemsize, num_cores,
                      target_out_bytes=6 << 20):
    """Row-block size: ~6 MiB of output per grid step (amortizes the ~0.35 us
    per-step overhead); on multi-TC parts, prefer an equal number of
    equal-size steps per core so no TensorCore idles."""
    rb_cap = max(8, target_out_bytes // max(odim * itemsize, 1))
    if num_cores <= 1 or num_rows < 16:
        if num_rows <= rb_cap:
            return num_rows                      # single full-array step
        return max(8, (min(rb_cap, num_rows) // 8) * 8)
    # multi-core: want num_rows % rb == 0 and (num_rows // rb) % num_cores == 0
    want = min(rb_cap, -(-num_rows // num_cores))
    rb = max(8, (want // 8) * 8)
    r = rb
    while r >= 8:
        if num_rows % r == 0 and (num_rows // r) % num_cores == 0:
            return r
        r -= 8
    return rb  # no clean split; accept a partial last block


def _vmem_tile_bytes(rows, cols, dtype):
    """In-VMEM footprint of a (rows, cols) tile (sublane/lane padded)."""
    return (-(-rows // 8) * 8) * (-(-cols // 128) * 128) * jnp.dtype(dtype).itemsize


def interpolate_nearest(x, scale_factor):
    """Pallas equivalent of F.interpolate(x, scale_factor=s, mode='nearest'), NCHW."""
    N, C, H, W = x.shape
    s = int(scale_factor)
    if s != scale_factor or s < 1:
        # TODO(synk): fractional scale_factor (general nearest index map) not implemented.
        raise ValueError("only positive integer scale_factor is supported")
    if s == 1:
        return x
    Ho, Wo = H * s, W * s

    if x.dtype == jnp.bfloat16:
        # Selection matmul (exactly one 1 per G column) is bit-exact in bf16;
        # accumulate/pop directly in bf16 (no f32 result buffer, no cast pass).
        compute_dtype, acc_dtype = jnp.bfloat16, jnp.bfloat16
        precision = jax.lax.Precision.DEFAULT
        kmax = 512
    elif x.dtype == jnp.float32:
        # HIGHEST precision: f32 operands are not truncated, so 'nearest' is a
        # bit-exact copy; the output-width fold keeps K small so the multi-pass
        # f32 matmul stays memory-bound even on v5e.
        compute_dtype, acc_dtype = jnp.float32, jnp.float32
        precision = jax.lax.Precision.HIGHEST
        kmax = 256
    else:
        # TODO(synk): integer / fp16 inputs are routed through f32 (exact only for
        # magnitudes < 2**24); a copy-based non-matmul path would be fully lossless.
        compute_dtype, acc_dtype = jnp.float32, jnp.float32
        precision = jax.lax.Precision.HIGHEST
        kmax = 256

    R = N * C * H                        # rows of the flattened 2-D view
    m = _choose_fold(W, s, kmax)         # input rows folded into one super row
    kdim = m * W                         # contraction K (folded input lane width)
    odim = kdim * s * s                  # folded output lane width (mult. of 128)
    R_pad = -(-R // m) * m               # pad rows so the fold reshape is exact
    num_rows = R_pad // m

    # Selection matrix G: a true compile-time constant built on the host
    # (no per-call iota/compare XLA ops), in the narrowest exact dtype.
    a = np.arange(odim) // Wo            # output row within the folded group
    jo = np.arange(odim) % Wo            # output column
    src = (a // s) * W + (jo // s)       # source column in the folded input row
    gmat = jnp.asarray(np.arange(kdim)[:, None] == src[None, :], dtype=compute_dtype)

    x2 = x.reshape(R, W)
    if R_pad != R:
        x2 = jnp.pad(x2, ((0, R_pad - R), (0, 0)))
    x2 = x2.reshape(num_rows, kdim)      # contiguous (free) reshape

    itemsize = jnp.dtype(x.dtype).itemsize
    num_cores = _num_tensorcores()
    rb = _choose_row_block(num_rows, odim, itemsize, num_cores)
    grid = (pl.cdiv(num_rows, rb),)

    # VMEM budget: double-buffered in/out blocks + single-buffered G + the live
    # matmul result, with headroom; within every generation's physical VMEM.
    budget = (2 * _vmem_tile_bytes(rb, kdim, x.dtype)
              + 2 * _vmem_tile_bytes(rb, odim, x.dtype)
              + _vmem_tile_bytes(kdim, odim, compute_dtype)
              + _vmem_tile_bytes(rb, odim, acc_dtype))
    vmem_limit = int(min(48 << 20, max(16 << 20, budget * 5 // 4 + (2 << 20))))

    # G is never re-fetched (constant index_map): single-buffer it to halve its
    # VMEM share, freeing budget for bigger row blocks.
    try:
        g_spec = pl.BlockSpec((kdim, odim), lambda i: (0, 0),
                              pipeline_mode=pl.Buffered(1))
    except Exception:  # compatibility fallback: default double-buffering
        g_spec = pl.BlockSpec((kdim, odim), lambda i: (0, 0))

    kernel = partial(_nearest_kernel, acc_dtype=acc_dtype, precision=precision)
    out2 = pl.pallas_call(
        kernel,
        out_shape=jax.ShapeDtypeStruct((num_rows, odim), x.dtype),
        grid_spec=pltpu.PrefetchScalarGridSpec(
            num_scalar_prefetch=0,
            grid=grid,
            in_specs=[
                g_spec,                                        # resident G
                pl.BlockSpec((rb, kdim), lambda i: (i, 0)),    # input row block
            ],
            out_specs=pl.BlockSpec((rb, odim), lambda i: (i, 0)),
        ),
        compiler_params=pltpu.CompilerParams(
            dimension_semantics=("parallel",),
            vmem_limit_bytes=vmem_limit),
    )(gmat, x2)

    out2d = out2.reshape(R_pad * s, Wo)
    if R_pad != R:
        out2d = out2d[: R * s]
    return out2d.reshape(N, C, Ho, Wo)


def interpolate(x, size=None, scale_factor=None, mode="nearest", align_corners=False):
    """Pallas analogue of F.interpolate for 4-D NCHW inputs (nearest only)."""
    if mode != "nearest":
        # TODO(synk): 'bilinear' / 'bicubic' modes are not implemented.
        raise NotImplementedError(f"mode={mode!r} not implemented")
    del align_corners  # ignored for 'nearest', as in PyTorch
    N, C, H, W = x.shape
    if scale_factor is None:
        if size is None:
            raise ValueError("either size or scale_factor must be given")
        sh, sw = (size, size) if isinstance(size, int) else tuple(size)
        if sh % H or sw % W or sh // H != sw // W:
            # TODO(synk): arbitrary target sizes (non-integer ratios) not implemented.
            raise NotImplementedError("size must be an equal integer multiple of H and W")
        scale_factor = sh // H
    return interpolate_nearest(x, scale_factor)


class Interpolate:
    """Forward-pass mirror of the PyTorch module (no parameters)."""

    def __init__(self, size=None, scale_factor=None, mode="nearest", align_corners=False):
        self.size = size
        self.scale_factor = scale_factor
        self.mode = mode
        self.align_corners = align_corners

    def __call__(self, x):
        return interpolate(x, size=self.size, scale_factor=self.scale_factor,
                           mode=self.mode, align_corners=self.align_corners)


if __name__ == "__main__":
    key = jax.random.PRNGKey(0)
    key, sub = jax.random.split(key)
    # NCHW input, matching the PyTorch module's conv-style layout.
    x = jax.random.normal(key, (2, 4, 16, 16), dtype=jnp.float32)

    module = Interpolate(scale_factor=2, mode="nearest", align_corners=False)
    y = jax.block_until_ready(module(x))

    # Pure-JAX reference of F.interpolate(..., scale_factor=2, mode='nearest')
    s = 2
    Ho, Wo = 16 * s, 16 * s
    idx_h = jnp.arange(Ho) // s
    idx_w = jnp.arange(Wo) // s
    ref = x[:, :, idx_h, :][:, :, :, idx_w]

    assert y.shape == (2, 4, Ho, Wo), y.shape
    assert y.dtype == x.dtype
    assert jnp.allclose(y, ref), "mismatch vs nearest-interp reference (f32)"

    # bf16 path: dtype-preserving data movement, bf16 accumulation, bit-exact.
    xb = x.astype(jnp.bfloat16)
    yb = jax.block_until_ready(interpolate_nearest(xb, scale_factor=2))
    refb = xb[:, :, idx_h, :][:, :, :, idx_w]
    assert yb.dtype == jnp.bfloat16
    assert jnp.array_equal(yb, refb), "mismatch vs nearest-interp reference (bf16)"

    # Non-divisible shape: exercises the row-padding fold (R=21 padded to 32)
    # and, on multi-TC parts, a partial last grid block.
    x_odd = jax.random.normal(sub, (1, 3, 7, 10), dtype=jnp.float32)
    y_odd = jax.block_until_ready(interpolate_nearest(x_odd, scale_factor=2))
    ih = jnp.arange(14) // 2
    iw = jnp.arange(20) // 2
    ref_odd = x_odd[:, :, ih, :][:, :, :, iw]
    assert y_odd.shape == (1, 3, 14, 20), y_odd.shape
    assert jnp.allclose(y_odd, ref_odd), "mismatch vs nearest-interp reference (odd shape)"

    print("KERNEL_OK")
</pallas_src>

<mosaic_0001>
module attributes {stable_mosaic.version = 11 : i64} {
  func.func @_nearest_kernel(%arg0: i32, %arg1: memref<32x128xf32, #tpu.memory_space<vmem>>, %arg2: memref<64x32xf32, #tpu.memory_space<vmem>>, %arg3: memref<64x128xf32, #tpu.memory_space<vmem>>) attributes {dimension_semantics = [#tpu.dimension_semantics<parallel>], iteration_bounds = array<i64: 1>, scalar_prefetch = 0 : i64, scratch_operands = 0 : i64, tpu.core_type = #tpu.core_type<tc>, window_params = [{pipeline_mode = #tpu.pipeline_mode<synchronous>, transform_indices = @transform_0, window_bounds = array<i64: 32, 128>}, {transform_indices = @transform_1, window_bounds = array<i64: 64, 32>}, {transform_indices = @transform_2, window_bounds = array<i64: 64, 128>}]} {
    %c0 = arith.constant 0 : index
    %c0_0 = arith.constant 0 : index
    %0 = vector.load %arg2[%c0, %c0_0] : memref<64x32xf32, #tpu.memory_space<vmem>>, vector<64x32xf32>
    %c0_1 = arith.constant 0 : index
    %c0_2 = arith.constant 0 : index
    %1 = vector.load %arg1[%c0_1, %c0_2] : memref<32x128xf32, #tpu.memory_space<vmem>>, vector<32x128xf32>
    %cst = arith.constant dense<0.000000e+00> : vector<64x128xf32>
    %2 = tpu.matmul %0, %1, %cst {dimension_numbers = #tpu.dot_dimension_numbers<[1], [0], [0], [1], [0, 0, 1, 1], [], []>, precision = #tpu.contract_precision<fp32>} : vector<64x32xf32>, vector<32x128xf32>, vector<64x128xf32> -> vector<64x128xf32>
    %c0_3 = arith.constant 0 : index
    %c0_4 = arith.constant 0 : index
    %3 = vector.load %arg3[%c0_3, %c0_4] : memref<64x128xf32, #tpu.memory_space<vmem>>, vector<64x128xf32>
    tpu.vector_store %arg3[%c0_3, %c0_4], %2 {strides = array<i32>} : memref<64x128xf32, #tpu.memory_space<vmem>>, vector<64x128xf32>,
    return
  }
  func.func @transform_0(%arg0: i32) -> (i32, i32) {
    %c0_i32 = arith.constant 0 : i32
    %c0_i32_0 = arith.constant 0 : i32
    %c0_i32_1 = arith.constant 0 : i32
    return %c0_i32, %c0_i32_0 : i32, i32
  }
  func.func @transform_1(%arg0: i32) -> (i32, i32) {
    %c0_i32 = arith.constant 0 : i32
    %c0_i32_0 = arith.constant 0 : i32
    return %arg0, %c0_i32 : i32, i32
  }
  func.func @transform_2(%arg0: i32) -> (i32, i32) {
    %c0_i32 = arith.constant 0 : i32
    %c0_i32_0 = arith.constant 0 : i32
    return %arg0, %c0_i32 : i32, i32
  }
}

</mosaic_0001>

<bundles_post_ra>
// kernel: tpu_custom_call.1
= control target key start
LH: loop header
LB: loop body
LE: loop exit
PB: predicated region body
PF: predicated region fallthrough
CT: control target
= control target key end

     0   :  { %vm24_vm0 = vcmask 261120   ;;  %s1357_s0 = inlined_call_operand.vmem [shape: f32[32,128], index: 0, kind: input, shape index: {}]   ;;  %s1358_s1 = inlined_call_operand.vmem [shape: f32[64,32], index: 1, kind: input, shape index: {}]   ;;  %s1359_s2 = inlined_call_operand.hbm [shape: f32[64,128], index: 2, kind: output, shape index: {}]  }
   0x1   :  { %v20_v0 = vld [vmem:[%s1357_s0] sm:$0xff]  ;;  %v21_v1 = vld [vmem:[%s1357_s0 + $0x8] sm:$0xff]  ;;  %v22_v2 = vld [vmem:[%s1357_s0 + $0x10] sm:$0xff] }
   0x2   :  { %v50_v3 = vand.u32 4294901760, %v20_v0  ;;  %v53_v4 = vand.u32 4294901760, %v21_v1  ;;  %v1196_v5 = vld [vmem:[%s1357_s0 + $0x18] sm:$0xff]  ;;  %v56_v6 = vand.u32 4294901760, %v22_v2  ;;  %v12_v7 = vld [vmem:[%s1358_s1] sm:$0xff]  ;;  %v13_v8 = vld [vmem:[%s1358_s1 + $0x8] sm:$0xff] }
   0x3   :  { %v59_v9 = vand.u32 4294901760, %v1196_v5  ;;  %v26_v10 = vsel %vm24_vm0, %v12_v7, 0  ;;  %v29_v11 = vsel %vm24_vm0, %v13_v8, 0  ;;  %v14_v12 = vld [vmem:[%s1358_s1 + $0x10] sm:$0xff]  ;;  %v15_v13 = vld [vmem:[%s1358_s1 + $0x18] sm:$0xff]  ;;  %v16_v18 = vld [vmem:[%s1358_s1 + $0x20] sm:$0xff] }
   0x4   :  { %v1213_v14 = vpack.c.bf16 %v53_v4, %v50_v3  ;;  %v1215_v15 = vand.u32 4294901760, %v26_v10  ;;  %v1217_v16 = vand.u32 4294901760, %v29_v11  ;;  %v1219_v17 = vsub.f32 %v20_v0, %v50_v3  ;;  %v17_v19 = vld [vmem:[%s1358_s1 + $0x28] sm:$0xff] }
   0x5   :  { %v1229_v20 = vpack.c.bf16 %v59_v9, %v56_v6  ;;  %v1231_v21 = vsub.f32 %v21_v1, %v53_v4  ;;  %v32_v22 = vsel %vm24_vm0, %v14_v12, 0  ;;  %v35_v23 = vsel %vm24_vm0, %v15_v13, 0 }
   0x6   :  { %7 = vsyncpa [#allocation3], 0  ;;  %1052 = vmatprep.subr.bf16.mxu1 %v1213_v14  ;;  %1076 = vmatprep.subr.bf16.mxu0 %v1213_v14  ;;  %v1238_v24 = vsub.f32 %v26_v10, %v1215_v15  ;;  %v1241_v25 = vsub.f32 %v29_v11, %v1217_v16  ;;  %v201_v26 = vand.u32 4294901760, %v1219_v17  ;;  %v1244_v27 = vand.u32 4294901760, %v32_v22  ;;  %v18_v48 = vld [vmem:[%s1358_s1 + $0x30] sm:$0xff]  ;;  %v19_v57 = vld [vmem:[%s1358_s1 + $0x38] sm:$0xff] }
   0x7   :  { %1054 = vmatpush3.bf16.msra.mxu1 %v1213_v14  ;;  %1078 = vmatpush3.bf16.msra.mxu0 %v1213_v14  ;;  %v208_v28 = vand.u32 4294901760, %v1231_v21  ;;  %v1249_v29 = vand.u32 4294901760, %v35_v23  ;;  %v38_v30 = vsel %vm24_vm0, %v16_v18, 0  ;;  %v41_v31 = vsel %vm24_vm0, %v17_v19, 0  ;;  %s1166_s1 = smov [#allocation2]  }
   0x8   :  { %1056 = vmatprep.subr.bf16.mxu1 %v1229_v20  ;;  %1080 = vmatprep.subr.bf16.mxu0 %v1229_v20  ;;  %v120_v32 = vand.u32 4294901760, %v1238_v24  ;;  %v130_v33 = vand.u32 4294901760, %v1241_v25  ;;  %v202_v34 = vsub.f32 %v1219_v17, %v201_v26  ;;  %v1259_v35 = vsub.f32 %v32_v22, %v1244_v27  ;;  %s848_s4 = sshll.u32 %s1166_s1, 4  ;;  %s849_s4 = int_to_ptr.vmem [resolvable:$true] %s848_s4 }
   0x9   :  { %v209_v36 = vsub.f32 %v1231_v21, %v208_v28  ;;  %v1083_v37 = vpack.c.bf16 %v208_v28, %v201_v26  ;;  %v1263_v38 = vsub.f32 %v35_v23, %v1249_v29  ;;  %v1265_v39 = vand.u32 4294901760, %v38_v30  ;;  %s1142_s5 = scalar_lea.vmem %s849_s4, 1024  ;;  %p1147_p1 = scmp.lt.s32.totalorder %s849_s4, %s849_s4 }
   0xa   :  { %v121_v40 = vsub.f32 %v1238_v24, %v120_v32  ;;  %999 = vmatprep.mubr.f32.mxu0 %v120_v32  ;;  %v131_v41 = vsub.f32 %v1241_v25, %v130_v33  ;;  %v203_v42 = vand.u32 4294901760, %v202_v34  ;;  %v140_v43 = vand.u32 4294901760, %v1259_v35  ;;  %p1143_p0 = scmp.ne.s32.totalorder %s849_s4, %s1142_s5  ;;  %p1148_p2 = scmp.lt.s32.totalorder %s1142_s5, %s1142_s5 }
   0xb   :  { %1058 = vmatpush3.bf16.msra.mxu1 %v1229_v20  ;;  %1082 = vmatpush3.bf16.msra.mxu0 %v1229_v20  ;;  %v210_v44 = vand.u32 4294901760, %v209_v36  ;;  %v150_v45 = vand.u32 4294901760, %v1263_v38  ;;  %v1274_v46 = vsub.f32 %v38_v30, %v1265_v39  ;;  %v1276_v47 = vand.u32 4294901760, %v41_v31 }
   0xc   :  { %v122_v49 = vand.u32 4294901760, %v121_v40  ;;  %v132_v50 = vand.u32 4294901760, %v131_v41  ;;  %1084 = vmatprep.subr.bf16.mxu0 %v1083_v37  ;;  %v141_v51 = vsub.f32 %v1259_v35, %v140_v43  ;;  %v214_v52 = vsub.f32 %v22_v2, %v56_v6  ;;  %p1149_p3 = por %p1148_p2, %p1147_p1 }
   0xd   :  { %v1059_v53 = vpack.c.bf16 %v210_v44, %v203_v42  ;;  %v151_v54 = vsub.f32 %v1263_v38, %v150_v45  ;;  %v160_v55 = vand.u32 4294901760, %v1274_v46  ;;  %v1285_v56 = vsub.f32 %v41_v31, %v1276_v47 }
   0xe   :  { %939 = vmatprep.mubr.f32.mxu1 %v122_v49  ;;  %1000 = vmatmul.mubr.f32.vlgmr.msra.gmra.mrb[0].mxu0 %v130_v33  ;;  %v142_v58 = vand.u32 4294901760, %v141_v51  ;;  %v215_v59 = vand.u32 4294901760, %v214_v52  ;;  %v221_v60 = vsub.f32 %v1196_v5, %v59_v9  ;;  %v44_v61 = vsel %vm24_vm0, %v18_v48, 0  ;;  %p1150_p4 = pnand %p1149_p3, %p1143_p0 }
   0xf   :  { %940 = vmatmul.mubr.f32.vlgmr.msra.gmra.mrb[0].mxu1 %v132_v50  ;;  %1060 = vmatprep.subr.bf16.mxu1 %v1059_v53  ;;  %v152_v62 = vand.u32 4294901760, %v151_v54  ;;  %v161_v63 = vsub.f32 %v1274_v46, %v160_v55  ;;  %v170_v0 = vand.u32 4294901760, %v1285_v56  ;;  %v1296_v1 = vand.u32 4294901760, %v44_v61 }
  0x10   :  { %1062 = vmatpush3.bf16.msra.mxu1 %v1059_v53  ;;  %1086 = vmatpush3.bf16.msra.mxu0 %v1083_v37  ;;  %v216_v2 = vsub.f32 %v214_v52, %v215_v59  ;;  %v222_v3 = vand.u32 4294901760, %v221_v60  ;;  %v47_v4 = vsel %vm24_vm0, %v19_v57, 0  ;;  %v1067_v28 = vpack.c.bf16 %v1231_v21, %v1219_v17 }
  0x11   :  { %942 = vmatprep.mubr.f32.mxu1 %v142_v58  ;;  %1002 = vmatprep.mubr.f32.mxu0 %v140_v43  ;;  %v162_v5 = vand.u32 4294901760, %v161_v63  ;;  %v171_v6 = vsub.f32 %v1285_v56, %v170_v0  ;;  %v1301_v7 = vsub.f32 %v44_v61, %v1296_v1  ;;  %v1303_v8 = vand.u32 4294901760, %v47_v4 }
  0x12   :  { %1003 = vmatmul.mubr.f32.gmra.mrb[2].mxu0 %v150_v45  ;;  %v217_v9 = vand.u32 4294901760, %v216_v2  ;;  %v223_v10 = vsub.f32 %v221_v60, %v222_v3  ;;  %v1087_v11 = vpack.c.bf16 %v222_v3, %v215_v59  ;;  %v1071_v33 = vpack.c.bf16 %v221_v60, %v214_v52 }
  0x13   :  { %943 = vmatmul.mubr.f32.gmra.mrb[2].mxu1 %v152_v62  ;;  %1005 = vmatprep.mubr.f32.mxu0 %v160_v55  ;;  %v172_v12 = vand.u32 4294901760, %v171_v6  ;;  %v180_v13 = vand.u32 4294901760, %v1301_v7  ;;  %v189_v18 = vsub.f32 %v47_v4, %v1303_v8 }
  0x14   :  { %945 = vmatprep.mubr.f32.mxu1 %v162_v5  ;;  %v224_v19 = vand.u32 4294901760, %v223_v10  ;;  %1088 = vmatprep.subr.bf16.mxu0 %v1087_v11 }
  0x15   :  { %1090 = vmatpush3.bf16.msra.mxu0 %v1087_v11  ;;  %v181_v22 = vsub.f32 %v1301_v7, %v180_v13  ;;  %v190_v23 = vand.u32 4294901760, %v189_v18 }
  0x16   :  { %v1063_v26 = vpack.c.bf16 %v224_v19, %v217_v9  ;;  %1006 = vmatmul.mubr.f32.gmra.mrb[4].mxu0 %v170_v0  ;;  %1092 = vmatprep.subr.bf16.mxu0 %v1213_v14 }
  0x17   :  { %946 = vmatmul.mubr.f32.gmra.mrb[4].mxu1 %v172_v12  ;;  %v182_v30 = vand.u32 4294901760, %v181_v22  ;;  %1008 = vmatprep.mubr.f32.mxu0 %v180_v13  ;;  %v191_v31 = vsub.f32 %v189_v18, %v190_v23 }
  0x18   :  { %1064 = vmatprep.subr.bf16.mxu1 %v1063_v26 }
  0x19   :  { %1066 = vmatpush3.bf16.msra.mxu1 %v1063_v26  ;;  %948 = vmatprep.mubr.f32.mxu1 %v182_v30  ;;  %v192_v32 = vand.u32 4294901760, %v191_v31 }
  0x1a   :  { %1009 = vmatmul.mubr.f32.gmra.mrb[6].mxu0 %v190_v23  ;;  %1068 = vmatprep.subr.bf16.mxu1 %v1067_v28 }
  0x1b   :  { %949 = vmatmul.mubr.f32.gmra.mrb[6].mxu1 %v192_v32  ;;  %1019 = vmatprep.mubr.f32.mxu0 %v1215_v15 }
  0x1c   :  { %959 = vmatprep.mubr.f32.mxu1 %v1215_v15 }
  0x1e   :  { %1020 = vmatmul.mubr.f32.vlgmr.msra.gmra.mrb[0].mxu0 %v1217_v16 }
  0x1f   :  { %960 = vmatmul.mubr.f32.vlgmr.msra.gmra.mrb[0].mxu1 %v1217_v16  ;;  %1094 = vmatpush3.bf16.msra.mxu0 %v1213_v14 }
  0x20   :  { %1070 = vmatpush3.bf16.msra.mxu1 %v1067_v28  ;;  %962 = vmatprep.mubr.f32.mxu1 %v1244_v27 }
  0x21   :  { %1022 = vmatprep.mubr.f32.mxu0 %v1244_v27  ;;  %1072 = vmatprep.subr.bf16.mxu1 %v1071_v33 }
  0x22   :  { %1023 = vmatmul.mubr.f32.gmra.mrb[2].mxu0 %v1249_v29  ;;  %1096 = vmatprep.subr.bf16.mxu0 %v1229_v20 }
  0x23   :  { %963 = vmatmul.mubr.f32.gmra.mrb[2].mxu1 %v1249_v29  ;;  %1025 = vmatprep.mubr.f32.mxu0 %v1265_v39 }
  0x24   :  { %965 = vmatprep.mubr.f32.mxu1 %v1265_v39  ;;  %1074 = vmatpush3.bf16.msra.mxu1 %v1071_v33 }
  0x25   :  { %1098 = vmatpush3.bf16.msra.mxu0 %v1229_v20 }
  0x26   :  { %1026 = vmatmul.mubr.f32.gmra.mrb[4].mxu0 %v1276_v47 }
  0x27   :  { %966 = vmatmul.mubr.f32.gmra.mrb[4].mxu1 %v1276_v47  ;;  %1028 = vmatprep.mubr.f32.mxu0 %v1296_v1 }
  0x28   :  { %968 = vmatprep.mubr.f32.mxu1 %v1296_v1 }
  0x2a   :  { %1029 = vmatmul.mubr.f32.gmra.mrb[6].mxu0 %v1303_v8 }
  0x2b   :  { %969 = vmatmul.mubr.f32.gmra.mrb[6].mxu1 %v1303_v8  ;;  %1039 = vmatprep.mubr.f32.mxu0 %v1215_v15 }
  0x2c   :  { %979 = vmatprep.mubr.f32.mxu1 %v1238_v24 }
  0x2e   :  { %1040 = vmatmul.mubr.f32.vlgmr.msra.gmra.mrb[0].mxu0 %v1217_v16 }
  0x2f   :  { %980 = vmatmul.mubr.f32.vlgmr.msra.gmra.mrb[0].mxu1 %v1241_v25  ;;  %1042 = vmatprep.mubr.f32.mxu0 %v1244_v27 }
  0x30   :  { %982 = vmatprep.mubr.f32.mxu1 %v1259_v35 }
  0x32   :  { %1043 = vmatmul.mubr.f32.gmra.mrb[2].mxu0 %v1249_v29 }
  0x33   :  { %983 = vmatmul.mubr.f32.gmra.mrb[2].mxu1 %v1263_v38  ;;  %1045 = vmatprep.mubr.f32.mxu0 %v1265_v39 }
  0x34   :  { %985 = vmatprep.mubr.f32.mxu1 %v1274_v46 }
  0x36   :  { %1046 = vmatmul.mubr.f32.gmra.mrb[4].mxu0 %v1276_v47 }
  0x37   :  { %986 = vmatmul.mubr.f32.gmra.mrb[4].mxu1 %v1285_v56  ;;  %1048 = vmatprep.mubr.f32.mxu0 %v1296_v1 }
  0x38   :  { %988 = vmatprep.mubr.f32.mxu1 %v1301_v7 }
  0x3a   :  { %1049 = vmatmul.mubr.f32.gmra.mrb[6].mxu0 %v1303_v8 }
  0x3b   :  { %989 = vmatmul.mubr.f32.gmra.mrb[6].mxu1 %v189_v18 }
 0x101   :  { %v1041_v14 = vpop.f32.mrb[0].mxu0 }
 0x102   :  { %v981_v15 = vpop.f32.mrb[0].mxu1  ;;  %v789_v16 = vpop.f32.mrb[1].mxu0 }
 0x103   :  { %v1099_v17 = vadd.f32 %v1041_v14, %v981_v15  ;;  %v407_v20 = vpop.f32.mrb[1].mxu1 }
 0x104   :  { %v1100_v21 = vadd.f32 %v789_v16, %v407_v20 }
 0x105   :  { %836 = vst [vmem:[#allocation2 + $0x8] sm:$0xff] %v1099_v17  ;;  %v1044_v24 = vpop.f32.mrb[2].mxu0 }
 0x106   :  { %835 = vst [vmem:[#allocation2] sm:$0xff] %v1100_v21  ;;  %v984_v25 = vpop.f32.mrb[2].mxu1  ;;  %v801_v27 = vpop.f32.mrb[3].mxu0 }
 0x107   :  { %v1101_v29 = vadd.f32 %v1044_v24, %v984_v25  ;;  %v421_v34 = vpop.f32.mrb[3].mxu1 }
 0x108   :  { %v1102_v35 = vadd.f32 %v801_v27, %v421_v34 }
 0x109   :  { %838 = vst [vmem:[#allocation2 + $0x18] sm:$0xff] %v1101_v29  ;;  %v1047_v36 = vpop.f32.mrb[4].mxu0 }
 0x10a   :  { %837 = vst [vmem:[#allocation2 + $0x10] sm:$0xff] %v1102_v35  ;;  %v987_v37 = vpop.f32.mrb[4].mxu1  ;;  %v813_v38 = vpop.f32.mrb[5].mxu0 }
 0x10b   :  { %v1103_v39 = vadd.f32 %v1047_v36, %v987_v37  ;;  %v435_v40 = vpop.f32.mrb[5].mxu1 }
 0x10c   :  { %v1104_v41 = vadd.f32 %v813_v38, %v435_v40 }
 0x10d   :  { %840 = vst [vmem:[#allocation2 + $0x28] sm:$0xff] %v1103_v39  ;;  %v1050_v42 = vpop.f32.mrb[6].mxu0 }
 0x10e   :  { %839 = vst [vmem:[#allocation2 + $0x20] sm:$0xff] %v1104_v41  ;;  %v990_v43 = vpop.f32.mrb[6].mxu1  ;;  %v825_v44 = vpop.f32.mrb[7].mxu0 }
 0x10f   :  { %v1105_v45 = vadd.f32 %v1050_v42, %v990_v43  ;;  %v449_v46 = vpop.f32.mrb[7].mxu1 }
 0x110   :  { %v1106_v47 = vadd.f32 %v825_v44, %v449_v46 }
 0x111   :  { %842 = vst [vmem:[#allocation2 + $0x38] sm:$0xff] %v1105_v45 }
 0x112   :  { %841 = vst [vmem:[#allocation2 + $0x30] sm:$0xff] %v1106_v47 }
 0x113   :  { %1153 = shalt.err (!%p1150_p4)
}
 0x114   :  { %s1154_s8 = scalar_lea.hbm %s1359_s2, 1024 }
 0x115   :  { %p1155_p5 = scmp.ne.s32.totalorder %s1359_s2, %s1154_s8  ;;  %p1158_p6 = scmp.lt.u32.totalorder %s1154_s8, %s1359_s2 }
 0x117   :  { %p1160_p7 = pnand %p1158_p6, %p1155_p5 }
 0x119   :  { %1163 = shalt.err (!%p1160_p7)
}
 0x11a   :  { %s1167_s13 = smov 128   ;;  %s1168_s14 = smov 8  }
 0x11b   :  { %854 = dma.vmem_to_hbm [thread:$0]  %s849_s4, 1024, %s1359_s2, [#allocation3], %s1167_s13, %s1167_s13, %s1168_s14  }
 0x11c   :  { %1164 = dma.done.wait [#allocation3], 1024  }
 0x11d   :  { %1165 = vsyncadd [#allocation3], 4294966272 }
 0x11e   :  { %858 = vsyncpa [#allocation3], 1 }

</bundles_post_ra>
